<compile_context>
chip_gen: v5e
topology: v5e:2x2
jax: 0.10.0
libtpu: 0.0.40
codegen_flags: <defaults>
</compile_context>

<pallas_src>
import functools

import jax
import jax.numpy as jnp
from jax import lax
from jax.experimental import pallas as pl
from jax.experimental.pallas import tpu as pltpu

LANE = 128
_ACC_ELEMS = 8192            # keep (TO, KB) f32 accumulators <= 2 * 32 KiB (16 vregs)
_VMEM_LIMIT_CACHE = None


# ---------------------------------------------------------------------------
# Hardware-aware sizing helpers
# ---------------------------------------------------------------------------
def _round_up(x, m):
    return (x + m - 1) // m * m


def _vmem_limit_bytes():
    """Generation-aware scoped-VMEM limit (v7x has only 64 MiB physical)."""
    global _VMEM_LIMIT_CACHE
    if _VMEM_LIMIT_CACHE is None:
        try:
            cap = int(pltpu.get_tpu_info().vmem_capacity_bytes)
        except Exception:
            cap = 64 * 1024 * 1024          # conservative fallback (v7x-sized)
        _VMEM_LIMIT_CACHE = min((cap * 3) // 4, 96 * 1024 * 1024)
    return _VMEM_LIMIT_CACHE


def _pick_tiles(B, Cin, Cout, Kpad, vmem_limit):
    """Pick (TO, TB): largest Cout tile (multiple of 8 or full Cout) and batch
    tile (<= 8) whose double-buffered VMEM footprint fits the budget."""
    budget = (vmem_limit * 7) // 10

    def footprint(to, tb):
        w = 2 * 2 * Cin * to * Kpad * 4      # 2 planes, double-buffered
        x = 2 * 2 * tb * Cin * Kpad * 4
        o = 2 * 2 * tb * to * Kpad * 4
        return w + x + o

    # Only tiles that satisfy the (8,128) layout rule: full Cout or multiple of 8.
    to_cands = [d for d in range(Cout, 0, -1)
                if Cout % d == 0 and (d == Cout or d % 8 == 0)]
    tb_cands = [d for d in range(min(B, 8), 0, -1) if B % d == 0]
    for to in to_cands:                       # prefer big TO (weight residency)
        for tb in tb_cands:                   # then big TB (amortize grid steps)
            if footprint(to, tb) <= budget:
                return to, tb
    return to_cands[-1], tb_cands[-1]         # best effort


def _pick_kb(to, Kpad):
    """Largest multiple-of-128 divisor of Kpad keeping both accumulators in vregs."""
    nlb = Kpad // LANE
    for d in range(nlb, 0, -1):
        if nlb % d == 0 and to * d * LANE <= _ACC_ELEMS:
            return d * LANE
    return LANE


# ---------------------------------------------------------------------------
# Pallas kernel: fused 2-corner complex contraction over in_channels
#   einsum('cbixy,cioxy->cboxy') with (x,y) flattened + padded to the lane axis.
# ---------------------------------------------------------------------------
def _spectral_kernel(xr_ref, xi_ref, wr_ref, wi_ref, or_ref, oi_ref, *, kb, unroll):
    # xr_ref, xi_ref : (TB, Cin, Kpad)  -- one (corner, batch-tile) slice of x modes
    # wr_ref, wi_ref : (Cin, TO, Kpad)  -- one (corner, cout-tile) weight slice
    # or_ref, oi_ref : (TB, TO, Kpad)   -- output modes for this grid cell
    tb, cin, kpad = xr_ref.shape
    to = wr_ref.shape[1]
    nkb = kpad // kb

    for kblk in range(nkb):                 # small static lane-block loop
        koff = kblk * kb                    # static offset -> cheap slices
        for b in range(tb):                 # small static batch loop
            def body(i, carry, _b=b, _koff=koff):
                acc_re, acc_im = carry
                # One explicit sublane broadcast of the x row per Cin step
                # (used twice below) instead of implicit (1,K) broadcasting.
                xr = jnp.broadcast_to(
                    xr_ref[_b, pl.ds(i, 1), pl.ds(_koff, kb)], (to, kb))
                xi = jnp.broadcast_to(
                    xi_ref[_b, pl.ds(i, 1), pl.ds(_koff, kb)], (to, kb))
                wr = wr_ref[i, :, pl.ds(_koff, kb)]      # (to, kb)
                wi = wi_ref[i, :, pl.ds(_koff, kb)]
                # Plain 4-multiply complex MAC (8 VALU ops / elem / step).
                acc_re = acc_re + (xr * wr - xi * wi)
                acc_im = acc_im + (xr * wi + xi * wr)
                return acc_re, acc_im

            zero = jnp.zeros((to, kb), jnp.float32)
            acc_re, acc_im = lax.fori_loop(0, cin, body, (zero, zero),
                                           unroll=unroll)
            # Each K-block written exactly once after its Cin loop.
            or_ref[b, :, pl.ds(koff, kb)] = acc_re
            oi_ref[b, :, pl.ds(koff, kb)] = acc_im


def _pad_last(a, kpad):
    k = a.shape[-1]
    if k == kpad:
        return a
    return jnp.pad(a, [(0, 0)] * (a.ndim - 1) + [(0, kpad - k)])


def spectral_corners_pallas(x_modes, weights):
    """Complex einsum('cbixy,cioxy->cboxy') on the retained Fourier modes.

    x_modes : (2, B, Cin, M1, M2) complex64  (corner 0 = low, 1 = high)
    weights : (2, Cin, Cout, M1, M2) complex64
    returns : (2, B, Cout, M1, M2) complex64
    """
    two, B, Cin, M1, M2 = x_modes.shape
    Cout = weights.shape[2]
    K = M1 * M2
    Kpad = max(LANE, _round_up(K, LANE))     # lane-dense stores (no vst.msk)

    # Split into real/imag float32 planes, flatten + pad modes to the lane axis.
    xr = _pad_last(jnp.real(x_modes).astype(jnp.float32).reshape(2, B, Cin, K), Kpad)
    xi = _pad_last(jnp.imag(x_modes).astype(jnp.float32).reshape(2, B, Cin, K), Kpad)
    wr = _pad_last(jnp.real(weights).astype(jnp.float32).reshape(2, Cin, Cout, K), Kpad)
    wi = _pad_last(jnp.imag(weights).astype(jnp.float32).reshape(2, Cin, Cout, K), Kpad)

    vmem_limit = _vmem_limit_bytes()
    TO, TB = _pick_tiles(B, Cin, Cout, Kpad, vmem_limit)
    KB = _pick_kb(TO, Kpad)
    n_ot = Cout // TO
    n_b = B // TB

    kernel = functools.partial(_spectral_kernel, kb=KB,
                               unroll=(True if Cin <= 8 else 2))

    # grid = (corner, cout_tile, batch_tile): batch innermost so the weight
    # block index is constant across it -> weights stay resident in VMEM.
    x_spec = pl.BlockSpec((None, TB, Cin, Kpad), lambda c, ot, b: (c, b, 0, 0))
    w_spec = pl.BlockSpec((None, Cin, TO, Kpad), lambda c, ot, b: (c, 0, ot, 0))
    o_spec = pl.BlockSpec((None, TB, TO, Kpad), lambda c, ot, b: (c, b, ot, 0))

    out_re, out_im = pl.pallas_call(
        kernel,
        out_shape=(jax.ShapeDtypeStruct((2, B, Cout, Kpad), jnp.float32),
                   jax.ShapeDtypeStruct((2, B, Cout, Kpad), jnp.float32)),
        grid=(2, n_ot, n_b),
        in_specs=[x_spec, x_spec, w_spec, w_spec],
        out_specs=(o_spec, o_spec),
        compiler_params=pltpu.CompilerParams(
            dimension_semantics=("parallel", "parallel", "arbitrary"),
            vmem_limit_bytes=vmem_limit),
    )(xr, xi, wr, wi)

    out = lax.complex(out_re[..., :K], out_im[..., :K])
    return out.reshape(2, B, Cout, M1, M2)


# ---------------------------------------------------------------------------
# Functional forward (jit-able) and module wrapper
# ---------------------------------------------------------------------------
@functools.partial(jax.jit, static_argnames=("modes1", "modes2"))
def fourier_spectral_conv2d(x, weights1, weights2, *, modes1, modes2):
    B, Cin, H, W = x.shape
    Cout = weights1.shape[1]
    m1, m2 = modes1, modes2
    Wf = W // 2 + 1

    # TODO(synk): FFT has no Pallas primitive; rfft2 / irfft2 stay in XLA.
    x_ft = jnp.fft.rfft2(x.astype(jnp.float32)).astype(jnp.complex64)

    # Fused low/high corner contraction in a single pallas_call.
    x_corners = jnp.stack(
        [x_ft[:, :, :m1, :m2], x_ft[:, :, H - m1:, :m2]], axis=0)
    w_corners = jnp.stack([weights1, weights2], axis=0)
    out = spectral_corners_pallas(x_corners, w_corners)
    lo, hi = out[0], out[1]

    # Assemble out_ft with pad/concat (no zeros + scatter round trips).
    pad_w = Wf - m2
    if H >= 2 * m1:
        lo_p = jnp.pad(lo, ((0, 0), (0, 0), (0, 0), (0, pad_w)))
        hi_p = jnp.pad(hi, ((0, 0), (0, 0), (0, 0), (0, pad_w)))
        mid = jnp.zeros((B, Cout, H - 2 * m1, Wf), dtype=jnp.complex64)
        out_ft = jnp.concatenate([lo_p, mid, hi_p], axis=2)
    else:
        # Overlapping corners (H < 2*m1): keep original scatter semantics.
        out_ft = jnp.zeros((B, Cout, H, Wf), dtype=jnp.complex64)
        out_ft = out_ft.at[:, :, :m1, :m2].set(lo)
        out_ft = out_ft.at[:, :, H - m1:, :m2].set(hi)

    y = jnp.fft.irfft2(out_ft, s=(H, W)).astype(jnp.float32)
    # ReLU left to XLA so it fuses into the irfft2 epilogue (a standalone
    # elementwise pallas_call would be a pure extra HBM round trip).
    return jnp.maximum(y, 0.0)


class FourierSpectralConv2dPallas:
    def __init__(self, in_channels, out_channels, n_modes=(16, 16), key=None):
        self.in_channels = in_channels
        self.out_channels = out_channels
        self.modes1, self.modes2 = ((n_modes, n_modes)
                                    if isinstance(n_modes, int)
                                    else tuple(n_modes))
        scale = 1.0 / (in_channels * out_channels)
        if key is None:
            key = jax.random.PRNGKey(0)
        k1, k2, k3, k4 = jax.random.split(key, 4)
        shape = (in_channels, out_channels, self.modes1, self.modes2)
        # torch.rand(dtype=cfloat) -> uniform [0,1) real + imag parts
        self.weights1 = (scale * jax.random.uniform(k1, shape, jnp.float32)
                         + 1j * scale * jax.random.uniform(k2, shape, jnp.float32)
                         ).astype(jnp.complex64)
        self.weights2 = (scale * jax.random.uniform(k3, shape, jnp.float32)
                         + 1j * scale * jax.random.uniform(k4, shape, jnp.float32)
                         ).astype(jnp.complex64)

    def __call__(self, x):
        B, Cin, H, W = x.shape
        assert Cin == self.in_channels
        assert self.modes1 <= H and self.modes2 <= W // 2 + 1, \
            "n_modes exceed the spectral extent of x"
        return fourier_spectral_conv2d(x, self.weights1, self.weights2,
                                       modes1=self.modes1, modes2=self.modes2)


# ---------------------------------------------------------------------------
# Pure-JAX reference for verification
# ---------------------------------------------------------------------------
def reference_forward(x, w1, w2, m1, m2):
    B, Cin, H, W = x.shape
    Cout = w1.shape[1]
    x_ft = jnp.fft.rfft2(x.astype(jnp.float32)).astype(jnp.complex64)
    out_ft = jnp.zeros((B, Cout, H, W // 2 + 1), dtype=jnp.complex64)
    out_ft = out_ft.at[:, :, :m1, :m2].set(
        jnp.einsum('bixy,ioxy->boxy', x_ft[:, :, :m1, :m2], w1))
    out_ft = out_ft.at[:, :, H - m1:, :m2].set(
        jnp.einsum('bixy,ioxy->boxy', x_ft[:, :, H - m1:, :m2], w2))
    y = jnp.fft.irfft2(out_ft, s=(H, W)).astype(jnp.float32)
    return jnp.maximum(y, 0.0)


if __name__ == "__main__":
    key = jax.random.PRNGKey(0)
    kx1, kw1, kx2, kw2 = jax.random.split(key, 4)

    # Config 1: small square case.
    B, Cin, Cout, H, W = 2, 4, 4, 16, 16
    x1 = jax.random.normal(kx1, (B, Cin, H, W), dtype=jnp.float32)
    mod1 = FourierSpectralConv2dPallas(Cin, Cout, n_modes=(4, 4), key=kw1)
    out1 = jax.block_until_ready(mod1(x1))
    ref1 = jax.block_until_ready(
        reference_forward(x1, mod1.weights1, mod1.weights2, 4, 4))
    assert out1.shape == (B, Cout, H, W)
    assert out1.dtype == jnp.float32
    assert jnp.allclose(out1, ref1, atol=1e-4, rtol=1e-4), "config1 mismatch"

    # Config 2: non-multiple-of-8 channels, rectangular modes, odd spectral pad.
    B2, Cin2, Cout2, H2, W2 = 2, 3, 6, 12, 16
    x2 = jax.random.normal(kx2, (B2, Cin2, H2, W2), dtype=jnp.float32)
    mod2 = FourierSpectralConv2dPallas(Cin2, Cout2, n_modes=(5, 3), key=kw2)
    out2 = jax.block_until_ready(mod2(x2))
    ref2 = jax.block_until_ready(
        reference_forward(x2, mod2.weights1, mod2.weights2, 5, 3))
    assert out2.shape == (B2, Cout2, H2, W2)
    assert jnp.allclose(out2, ref2, atol=1e-4, rtol=1e-4), "config2 mismatch"

    print("KERNEL_OK")
</pallas_src>

<mosaic_0001>
module attributes {stable_mosaic.version = 11 : i64} {
  func.func @_spectral_kernel(%arg0: i32, %arg1: i32, %arg2: i32, %arg3: memref<1x2x4x128xf32, #tpu.memory_space<vmem>>, %arg4: memref<1x2x4x128xf32, #tpu.memory_space<vmem>>, %arg5: memref<1x4x4x128xf32, #tpu.memory_space<vmem>>, %arg6: memref<1x4x4x128xf32, #tpu.memory_space<vmem>>, %arg7: memref<1x2x4x128xf32, #tpu.memory_space<vmem>>, %arg8: memref<1x2x4x128xf32, #tpu.memory_space<vmem>>) attributes {dimension_semantics = [#tpu.dimension_semantics<parallel>, #tpu.dimension_semantics<parallel>, #tpu.dimension_semantics<arbitrary>], iteration_bounds = array<i64: 2, 1, 1>, scalar_prefetch = 0 : i64, scratch_operands = 0 : i64, tpu.core_type = #tpu.core_type<tc>, window_params = [{transform_indices = @transform_0, window_bounds = array<i64: 1, 2, 4, 128>}, {transform_indices = @transform_1, window_bounds = array<i64: 1, 2, 4, 128>}, {transform_indices = @transform_2, window_bounds = array<i64: 1, 4, 4, 128>}, {transform_indices = @transform_3, window_bounds = array<i64: 1, 4, 4, 128>}, {transform_indices = @transform_4, window_bounds = array<i64: 1, 2, 4, 128>}, {transform_indices = @transform_5, window_bounds = array<i64: 1, 2, 4, 128>}]} {
    %cst = arith.constant 0.000000e+00 : f32
    %0 = vector.broadcast %cst : f32 to vector<4x128xf32>
    %c0_i32 = arith.constant 0 : i32
    %c0 = arith.constant 0 : index
    %c0_0 = arith.constant 0 : index
    %1 = arith.index_cast %c0_i32 : i32 to index
    %c0_1 = arith.constant 0 : index
    %2 = vector.load %arg3[%c0, %c0_0, %1, %c0_1] : memref<1x2x4x128xf32, #tpu.memory_space<vmem>>, vector<1x1x1x128xf32>
    %3 = vector.shape_cast %2 : vector<1x1x1x128xf32> to vector<1x128xf32>
    %4 = vector.shape_cast %3 : vector<1x128xf32> to vector<1x128xf32>
    %5 = vector.broadcast %4 : vector<1x128xf32> to vector<4x128xf32>
    %c0_2 = arith.constant 0 : index
    %c0_3 = arith.constant 0 : index
    %6 = arith.index_cast %c0_i32 : i32 to index
    %c0_4 = arith.constant 0 : index
    %7 = vector.load %arg4[%c0_2, %c0_3, %6, %c0_4] : memref<1x2x4x128xf32, #tpu.memory_space<vmem>>, vector<1x1x1x128xf32>
    %8 = vector.shape_cast %7 : vector<1x1x1x128xf32> to vector<1x128xf32>
    %9 = vector.shape_cast %8 : vector<1x128xf32> to vector<1x128xf32>
    %10 = vector.broadcast %9 : vector<1x128xf32> to vector<4x128xf32>
    %c0_5 = arith.constant 0 : index
    %11 = arith.index_cast %c0_i32 : i32 to index
    %c0_6 = arith.constant 0 : index
    %c0_7 = arith.constant 0 : index
    %12 = vector.load %arg5[%c0_5, %11, %c0_6, %c0_7] : memref<1x4x4x128xf32, #tpu.memory_space<vmem>>, vector<1x1x4x128xf32>
    %13 = vector.shape_cast %12 : vector<1x1x4x128xf32> to vector<4x128xf32>
    %c0_8 = arith.constant 0 : index
    %14 = arith.index_cast %c0_i32 : i32 to index
    %c0_9 = arith.constant 0 : index
    %c0_10 = arith.constant 0 : index
    %15 = vector.load %arg6[%c0_8, %14, %c0_9, %c0_10] : memref<1x4x4x128xf32, #tpu.memory_space<vmem>>, vector<1x1x4x128xf32>
    %16 = vector.shape_cast %15 : vector<1x1x4x128xf32> to vector<4x128xf32>
    %17 = arith.mulf %5, %13 : vector<4x128xf32>
    %18 = arith.mulf %10, %16 : vector<4x128xf32>
    %19 = arith.subf %17, %18 : vector<4x128xf32>
    %20 = arith.addf %0, %19 : vector<4x128xf32>
    %21 = arith.mulf %5, %16 : vector<4x128xf32>
    %22 = arith.mulf %10, %13 : vector<4x128xf32>
    %23 = arith.addf %21, %22 : vector<4x128xf32>
    %24 = arith.addf %0, %23 : vector<4x128xf32>
    %c1_i32 = arith.constant 1 : i32
    %c0_11 = arith.constant 0 : index
    %c0_12 = arith.constant 0 : index
    %25 = arith.index_cast %c1_i32 : i32 to index
    %c0_13 = arith.constant 0 : index
    %26 = vector.load %arg3[%c0_11, %c0_12, %25, %c0_13] : memref<1x2x4x128xf32, #tpu.memory_space<vmem>>, vector<1x1x1x128xf32>
    %27 = vector.shape_cast %26 : vector<1x1x1x128xf32> to vector<1x128xf32>
    %28 = vector.shape_cast %27 : vector<1x128xf32> to vector<1x128xf32>
    %29 = vector.broadcast %28 : vector<1x128xf32> to vector<4x128xf32>
    %c0_14 = arith.constant 0 : index
    %c0_15 = arith.constant 0 : index
    %30 = arith.index_cast %c1_i32 : i32 to index
    %c0_16 = arith.constant 0 : index
    %31 = vector.load %arg4[%c0_14, %c0_15, %30, %c0_16] : memref<1x2x4x128xf32, #tpu.memory_space<vmem>>, vector<1x1x1x128xf32>
    %32 = vector.shape_cast %31 : vector<1x1x1x128xf32> to vector<1x128xf32>
    %33 = vector.shape_cast %32 : vector<1x128xf32> to vector<1x128xf32>
    %34 = vector.broadcast %33 : vector<1x128xf32> to vector<4x128xf32>
    %c0_17 = arith.constant 0 : index
    %35 = arith.index_cast %c1_i32 : i32 to index
    %c0_18 = arith.constant 0 : index
    %c0_19 = arith.constant 0 : index
    %36 = vector.load %arg5[%c0_17, %35, %c0_18, %c0_19] : memref<1x4x4x128xf32, #tpu.memory_space<vmem>>, vector<1x1x4x128xf32>
    %37 = vector.shape_cast %36 : vector<1x1x4x128xf32> to vector<4x128xf32>
    %c0_20 = arith.constant 0 : index
    %38 = arith.index_cast %c1_i32 : i32 to index
    %c0_21 = arith.constant 0 : index
    %c0_22 = arith.constant 0 : index
    %39 = vector.load %arg6[%c0_20, %38, %c0_21, %c0_22] : memref<1x4x4x128xf32, #tpu.memory_space<vmem>>, vector<1x1x4x128xf32>
    %40 = vector.shape_cast %39 : vector<1x1x4x128xf32> to vector<4x128xf32>
    %41 = arith.mulf %29, %37 : vector<4x128xf32>
    %42 = arith.mulf %34, %40 : vector<4x128xf32>
    %43 = arith.subf %41, %42 : vector<4x128xf32>
    %44 = arith.addf %20, %43 : vector<4x128xf32>
    %45 = arith.mulf %29, %40 : vector<4x128xf32>
    %46 = arith.mulf %34, %37 : vector<4x128xf32>
    %47 = arith.addf %45, %46 : vector<4x128xf32>
    %48 = arith.addf %24, %47 : vector<4x128xf32>
    %c2_i32 = arith.constant 2 : i32
    %c0_23 = arith.constant 0 : index
    %c0_24 = arith.constant 0 : index
    %49 = arith.index_cast %c2_i32 : i32 to index
    %c0_25 = arith.constant 0 : index
    %50 = vector.load %arg3[%c0_23, %c0_24, %49, %c0_25] : memref<1x2x4x128xf32, #tpu.memory_space<vmem>>, vector<1x1x1x128xf32>
    %51 = vector.shape_cast %50 : vector<1x1x1x128xf32> to vector<1x128xf32>
    %52 = vector.shape_cast %51 : vector<1x128xf32> to vector<1x128xf32>
    %53 = vector.broadcast %52 : vector<1x128xf32> to vector<4x128xf32>
    %c0_26 = arith.constant 0 : index
    %c0_27 = arith.constant 0 : index
    %54 = arith.index_cast %c2_i32 : i32 to index
    %c0_28 = arith.constant 0 : index
    %55 = vector.load %arg4[%c0_26, %c0_27, %54, %c0_28] : memref<1x2x4x128xf32, #tpu.memory_space<vmem>>, vector<1x1x1x128xf32>
    %56 = vector.shape_cast %55 : vector<1x1x1x128xf32> to vector<1x128xf32>
    %57 = vector.shape_cast %56 : vector<1x128xf32> to vector<1x128xf32>
    %58 = vector.broadcast %57 : vector<1x128xf32> to vector<4x128xf32>
    %c0_29 = arith.constant 0 : index
    %59 = arith.index_cast %c2_i32 : i32 to index
    %c0_30 = arith.constant 0 : index
    %c0_31 = arith.constant 0 : index
    %60 = vector.load %arg5[%c0_29, %59, %c0_30, %c0_31] : memref<1x4x4x128xf32, #tpu.memory_space<vmem>>, vector<1x1x4x128xf32>
    %61 = vector.shape_cast %60 : vector<1x1x4x128xf32> to vector<4x128xf32>
    %c0_32 = arith.constant 0 : index
    %62 = arith.index_cast %c2_i32 : i32 to index
    %c0_33 = arith.constant 0 : index
    %c0_34 = arith.constant 0 : index
    %63 = vector.load %arg6[%c0_32, %62, %c0_33, %c0_34] : memref<1x4x4x128xf32, #tpu.memory_space<vmem>>, vector<1x1x4x128xf32>
    %64 = vector.shape_cast %63 : vector<1x1x4x128xf32> to vector<4x128xf32>
    %65 = arith.mulf %53, %61 : vector<4x128xf32>
    %66 = arith.mulf %58, %64 : vector<4x128xf32>
    %67 = arith.subf %65, %66 : vector<4x128xf32>
    %68 = arith.addf %44, %67 : vector<4x128xf32>
    %69 = arith.mulf %53, %64 : vector<4x128xf32>
    %70 = arith.mulf %58, %61 : vector<4x128xf32>
    %71 = arith.addf %69, %70 : vector<4x128xf32>
    %72 = arith.addf %48, %71 : vector<4x128xf32>
    %c3_i32 = arith.constant 3 : i32
    %c0_35 = arith.constant 0 : index
    %c0_36 = arith.constant 0 : index
    %73 = arith.index_cast %c3_i32 : i32 to index
    %c0_37 = arith.constant 0 : index
    %74 = vector.load %arg3[%c0_35, %c0_36, %73, %c0_37] : memref<1x2x4x128xf32, #tpu.memory_space<vmem>>, vector<1x1x1x128xf32>
    %75 = vector.shape_cast %74 : vector<1x1x1x128xf32> to vector<1x128xf32>
    %76 = vector.shape_cast %75 : vector<1x128xf32> to vector<1x128xf32>
    %77 = vector.broadcast %76 : vector<1x128xf32> to vector<4x128xf32>
    %c0_38 = arith.constant 0 : index
    %c0_39 = arith.constant 0 : index
    %78 = arith.index_cast %c3_i32 : i32 to index
    %c0_40 = arith.constant 0 : index
    %79 = vector.load %arg4[%c0_38, %c0_39, %78, %c0_40] : memref<1x2x4x128xf32, #tpu.memory_space<vmem>>, vector<1x1x1x128xf32>
    %80 = vector.shape_cast %79 : vector<1x1x1x128xf32> to vector<1x128xf32>
    %81 = vector.shape_cast %80 : vector<1x128xf32> to vector<1x128xf32>
    %82 = vector.broadcast %81 : vector<1x128xf32> to vector<4x128xf32>
    %c0_41 = arith.constant 0 : index
    %83 = arith.index_cast %c3_i32 : i32 to index
    %c0_42 = arith.constant 0 : index
    %c0_43 = arith.constant 0 : index
    %84 = vector.load %arg5[%c0_41, %83, %c0_42, %c0_43] : memref<1x4x4x128xf32, #tpu.memory_space<vmem>>, vector<1x1x4x128xf32>
    %85 = vector.shape_cast %84 : vector<1x1x4x128xf32> to vector<4x128xf32>
    %c0_44 = arith.constant 0 : index
    %86 = arith.index_cast %c3_i32 : i32 to index
    %c0_45 = arith.constant 0 : index
    %c0_46 = arith.constant 0 : index
    %87 = vector.load %arg6[%c0_44, %86, %c0_45, %c0_46] : memref<1x4x4x128xf32, #tpu.memory_space<vmem>>, vector<1x1x4x128xf32>
    %88 = vector.shape_cast %87 : vector<1x1x4x128xf32> to vector<4x128xf32>
    %89 = arith.mulf %77, %85 : vector<4x128xf32>
    %90 = arith.mulf %82, %88 : vector<4x128xf32>
    %91 = arith.subf %89, %90 : vector<4x128xf32>
    %92 = arith.addf %68, %91 : vector<4x128xf32>
    %93 = arith.mulf %77, %88 : vector<4x128xf32>
    %94 = arith.mulf %82, %85 : vector<4x128xf32>
    %95 = arith.addf %93, %94 : vector<4x128xf32>
    %96 = arith.addf %72, %95 : vector<4x128xf32>
    %c4_i32 = arith.constant 4 : i32
    %c0_47 = arith.constant 0 : index
    %c0_48 = arith.constant 0 : index
    %c0_49 = arith.constant 0 : index
    %c0_50 = arith.constant 0 : index
    %97 = vector.load %arg7[%c0_47, %c0_48, %c0_49, %c0_50] : memref<1x2x4x128xf32, #tpu.memory_space<vmem>>, vector<1x1x4x128xf32>
    %98 = vector.shape_cast %97 : vector<1x1x4x128xf32> to vector<4x128xf32>
    %99 = vector.shape_cast %92 : vector<4x128xf32> to vector<1x1x4x128xf32>
    tpu.vector_store %arg7[%c0_47, %c0_48, %c0_49, %c0_50], %99 {strides = array<i32>} : memref<1x2x4x128xf32, #tpu.memory_space<vmem>>, vector<1x1x4x128xf32>,
    %c0_51 = arith.constant 0 : index
    %c0_52 = arith.constant 0 : index
    %c0_53 = arith.constant 0 : index
    %c0_54 = arith.constant 0 : index
    %100 = vector.load %arg8[%c0_51, %c0_52, %c0_53, %c0_54] : memref<1x2x4x128xf32, #tpu.memory_space<vmem>>, vector<1x1x4x128xf32>
    %101 = vector.shape_cast %100 : vector<1x1x4x128xf32> to vector<4x128xf32>
    %102 = vector.shape_cast %96 : vector<4x128xf32> to vector<1x1x4x128xf32>
    tpu.vector_store %arg8[%c0_51, %c0_52, %c0_53, %c0_54], %102 {strides = array<i32>} : memref<1x2x4x128xf32, #tpu.memory_space<vmem>>, vector<1x1x4x128xf32>,
    %cst_55 = arith.constant 0.000000e+00 : f32
    %103 = vector.broadcast %cst_55 : f32 to vector<4x128xf32>
    %c0_i32_56 = arith.constant 0 : i32
    %c0_57 = arith.constant 0 : index
    %c1 = arith.constant 1 : index
    %104 = arith.index_cast %c0_i32_56 : i32 to index
    %c0_58 = arith.constant 0 : index
    %105 = vector.load %arg3[%c0_57, %c1, %104, %c0_58] : memref<1x2x4x128xf32, #tpu.memory_space<vmem>>, vector<1x1x1x128xf32>
    %106 = vector.shape_cast %105 : vector<1x1x1x128xf32> to vector<1x128xf32>
    %107 = vector.shape_cast %106 : vector<1x128xf32> to vector<1x128xf32>
    %108 = vector.broadcast %107 : vector<1x128xf32> to vector<4x128xf32>
    %c0_59 = arith.constant 0 : index
    %c1_60 = arith.constant 1 : index
    %109 = arith.index_cast %c0_i32_56 : i32 to index
    %c0_61 = arith.constant 0 : index
    %110 = vector.load %arg4[%c0_59, %c1_60, %109, %c0_61] : memref<1x2x4x128xf32, #tpu.memory_space<vmem>>, vector<1x1x1x128xf32>
    %111 = vector.shape_cast %110 : vector<1x1x1x128xf32> to vector<1x128xf32>
    %112 = vector.shape_cast %111 : vector<1x128xf32> to vector<1x128xf32>
    %113 = vector.broadcast %112 : vector<1x128xf32> to vector<4x128xf32>
    %c0_62 = arith.constant 0 : index
    %114 = arith.index_cast %c0_i32_56 : i32 to index
    %c0_63 = arith.constant 0 : index
    %c0_64 = arith.constant 0 : index
    %115 = vector.load %arg5[%c0_62, %114, %c0_63, %c0_64] : memref<1x4x4x128xf32, #tpu.memory_space<vmem>>, vector<1x1x4x128xf32>
    %116 = vector.shape_cast %115 : vector<1x1x4x128xf32> to vector<4x128xf32>
    %c0_65 = arith.constant 0 : index
    %117 = arith.index_cast %c0_i32_56 : i32 to index
    %c0_66 = arith.constant 0 : index
    %c0_67 = arith.constant 0 : index
    %118 = vector.load %arg6[%c0_65, %117, %c0_66, %c0_67] : memref<1x4x4x128xf32, #tpu.memory_space<vmem>>, vector<1x1x4x128xf32>
    %119 = vector.shape_cast %118 : vector<1x1x4x128xf32> to vector<4x128xf32>
    %120 = arith.mulf %108, %116 : vector<4x128xf32>
    %121 = arith.mulf %113, %119 : vector<4x128xf32>
    %122 = arith.subf %120, %121 : vector<4x128xf32>
    %123 = arith.addf %103, %122 : vector<4x128xf32>
    %124 = arith.mulf %108, %119 : vector<4x128xf32>
    %125 = arith.mulf %113, %116 : vector<4x128xf32>
    %126 = arith.addf %124, %125 : vector<4x128xf32>
    %127 = arith.addf %103, %126 : vector<4x128xf32>
    %c1_i32_68 = arith.constant 1 : i32
    %c0_69 = arith.constant 0 : index
    %c1_70 = arith.constant 1 : index
    %128 = arith.index_cast %c1_i32_68 : i32 to index
    %c0_71 = arith.constant 0 : index
    %129 = vector.load %arg3[%c0_69, %c1_70, %128, %c0_71] : memref<1x2x4x128xf32, #tpu.memory_space<vmem>>, vector<1x1x1x128xf32>
    %130 = vector.shape_cast %129 : vector<1x1x1x128xf32> to vector<1x128xf32>
    %131 = vector.shape_cast %130 : vector<1x128xf32> to vector<1x128xf32>
    %132 = vector.broadcast %131 : vector<1x128xf32> to vector<4x128xf32>
    %c0_72 = arith.constant 0 : index
    %c1_73 = arith.constant 1 : index
    %133 = arith.index_cast %c1_i32_68 : i32 to index
    %c0_74 = arith.constant 0 : index
    %134 = vector.load %arg4[%c0_72, %c1_73, %133, %c0_74] : memref<1x2x4x128xf32, #tpu.memory_space<vmem>>, vector<1x1x1x128xf32>
    %135 = vector.shape_cast %134 : vector<1x1x1x128xf32> to vector<1x128xf32>
    %136 = vector.shape_cast %135 : vector<1x128xf32> to vector<1x128xf32>
    %137 = vector.broadcast %136 : vector<1x128xf32> to vector<4x128xf32>
    %c0_75 = arith.constant 0 : index
    %138 = arith.index_cast %c1_i32_68 : i32 to index
    %c0_76 = arith.constant 0 : index
    %c0_77 = arith.constant 0 : index
    %139 = vector.load %arg5[%c0_75, %138, %c0_76, %c0_77] : memref<1x4x4x128xf32, #tpu.memory_space<vmem>>, vector<1x1x4x128xf32>
    %140 = vector.shape_cast %139 : vector<1x1x4x128xf32> to vector<4x128xf32>
    %c0_78 = arith.constant 0 : index
    %141 = arith.index_cast %c1_i32_68 : i32 to index
    %c0_79 = arith.constant 0 : index
    %c0_80 = arith.constant 0 : index
    %142 = vector.load %arg6[%c0_78, %141, %c0_79, %c0_80] : memref<1x4x4x128xf32, #tpu.memory_space<vmem>>, vector<1x1x4x128xf32>
    %143 = vector.shape_cast %142 : vector<1x1x4x128xf32> to vector<4x128xf32>
    %144 = arith.mulf %132, %140 : vector<4x128xf32>
    %145 = arith.mulf %137, %143 : vector<4x128xf32>
    %146 = arith.subf %144, %145 : vector<4x128xf32>
    %147 = arith.addf %123, %146 : vector<4x128xf32>
    %148 = arith.mulf %132, %143 : vector<4x128xf32>
    %149 = arith.mulf %137, %140 : vector<4x128xf32>
    %150 = arith.addf %148, %149 : vector<4x128xf32>
    %151 = arith.addf %127, %150 : vector<4x128xf32>
    %c2_i32_81 = arith.constant 2 : i32
    %c0_82 = arith.constant 0 : index
    %c1_83 = arith.constant 1 : index
    %152 = arith.index_cast %c2_i32_81 : i32 to index
    %c0_84 = arith.constant 0 : index
    %153 = vector.load %arg3[%c0_82, %c1_83, %152, %c0_84] : memref<1x2x4x128xf32, #tpu.memory_space<vmem>>, vector<1x1x1x128xf32>
    %154 = vector.shape_cast %153 : vector<1x1x1x128xf32> to vector<1x128xf32>
    %155 = vector.shape_cast %154 : vector<1x128xf32> to vector<1x128xf32>
    %156 = vector.broadcast %155 : vector<1x128xf32> to vector<4x128xf32>
    %c0_85 = arith.constant 0 : index
    %c1_86 = arith.constant 1 : index
    %157 = arith.index_cast %c2_i32_81 : i32 to index
    %c0_87 = arith.constant 0 : index
    %158 = vector.load %arg4[%c0_85, %c1_86, %157, %c0_87] : memref<1x2x4x128xf32, #tpu.memory_space<vmem>>, vector<1x1x1x128xf32>
    %159 = vector.shape_cast %158 : vector<1x1x1x128xf32> to vector<1x128xf32>
    %160 = vector.shape_cast %159 : vector<1x128xf32> to vector<1x128xf32>
    %161 = vector.broadcast %160 : vector<1x128xf32> to vector<4x128xf32>
    %c0_88 = arith.constant 0 : index
    %162 = arith.index_cast %c2_i32_81 : i32 to index
    %c0_89 = arith.constant 0 : index
    %c0_90 = arith.constant 0 : index
    %163 = vector.load %arg5[%c0_88, %162, %c0_89, %c0_90] : memref<1x4x4x128xf32, #tpu.memory_space<vmem>>, vector<1x1x4x128xf32>
    %164 = vector.shape_cast %163 : vector<1x1x4x128xf32> to vector<4x128xf32>
    %c0_91 = arith.constant 0 : index
    %165 = arith.index_cast %c2_i32_81 : i32 to index
    %c0_92 = arith.constant 0 : index
    %c0_93 = arith.constant 0 : index
    %166 = vector.load %arg6[%c0_91, %165, %c0_92, %c0_93] : memref<1x4x4x128xf32, #tpu.memory_space<vmem>>, vector<1x1x4x128xf32>
    %167 = vector.shape_cast %166 : vector<1x1x4x128xf32> to vector<4x128xf32>
    %168 = arith.mulf %156, %164 : vector<4x128xf32>
    %169 = arith.mulf %161, %167 : vector<4x128xf32>
    %170 = arith.subf %168, %169 : vector<4x128xf32>
    %171 = arith.addf %147, %170 : vector<4x128xf32>
    %172 = arith.mulf %156, %167 : vector<4x128xf32>
    %173 = arith.mulf %161, %164 : vector<4x128xf32>
    %174 = arith.addf %172, %173 : vector<4x128xf32>
    %175 = arith.addf %151, %174 : vector<4x128xf32>
    %c3_i32_94 = arith.constant 3 : i32
    %c0_95 = arith.constant 0 : index
    %c1_96 = arith.constant 1 : index
    %176 = arith.index_cast %c3_i32_94 : i32 to index
    %c0_97 = arith.constant 0 : index
    %177 = vector.load %arg3[%c0_95, %c1_96, %176, %c0_97] : memref<1x2x4x128xf32, #tpu.memory_space<vmem>>, vector<1x1x1x128xf32>
    %178 = vector.shape_cast %177 : vector<1x1x1x128xf32> to vector<1x128xf32>
    %179 = vector.shape_cast %178 : vector<1x128xf32> to vector<1x128xf32>
    %180 = vector.broadcast %179 : vector<1x128xf32> to vector<4x128xf32>
    %c0_98 = arith.constant 0 : index
    %c1_99 = arith.constant 1 : index
    %181 = arith.index_cast %c3_i32_94 : i32 to index
    %c0_100 = arith.constant 0 : index
    %182 = vector.load %arg4[%c0_98, %c1_99, %181, %c0_100] : memref<1x2x4x128xf32, #tpu.memory_space<vmem>>, vector<1x1x1x128xf32>
    %183 = vector.shape_cast %182 : vector<1x1x1x128xf32> to vector<1x128xf32>
    %184 = vector.shape_cast %183 : vector<1x128xf32> to vector<1x128xf32>
    %185 = vector.broadcast %184 : vector<1x128xf32> to vector<4x128xf32>
    %c0_101 = arith.constant 0 : index
    %186 = arith.index_cast %c3_i32_94 : i32 to index
    %c0_102 = arith.constant 0 : index
    %c0_103 = arith.constant 0 : index
    %187 = vector.load %arg5[%c0_101, %186, %c0_102, %c0_103] : memref<1x4x4x128xf32, #tpu.memory_space<vmem>>, vector<1x1x4x128xf32>
    %188 = vector.shape_cast %187 : vector<1x1x4x128xf32> to vector<4x128xf32>
    %c0_104 = arith.constant 0 : index
    %189 = arith.index_cast %c3_i32_94 : i32 to index
    %c0_105 = arith.constant 0 : index
    %c0_106 = arith.constant 0 : index
    %190 = vector.load %arg6[%c0_104, %189, %c0_105, %c0_106] : memref<1x4x4x128xf32, #tpu.memory_space<vmem>>, vector<1x1x4x128xf32>
    %191 = vector.shape_cast %190 : vector<1x1x4x128xf32> to vector<4x128xf32>
    %192 = arith.mulf %180, %188 : vector<4x128xf32>
    %193 = arith.mulf %185, %191 : vector<4x128xf32>
    %194 = arith.subf %192, %193 : vector<4x128xf32>
    %195 = arith.addf %171, %194 : vector<4x128xf32>
    %196 = arith.mulf %180, %191 : vector<4x128xf32>
    %197 = arith.mulf %185, %188 : vector<4x128xf32>
    %198 = arith.addf %196, %197 : vector<4x128xf32>
    %199 = arith.addf %175, %198 : vector<4x128xf32>
    %c4_i32_107 = arith.constant 4 : i32
    %c0_108 = arith.constant 0 : index
    %c1_109 = arith.constant 1 : index
    %c0_110 = arith.constant 0 : index
    %c0_111 = arith.constant 0 : index
    %200 = vector.load %arg7[%c0_108, %c1_109, %c0_110, %c0_111] : memref<1x2x4x128xf32, #tpu.memory_space<vmem>>, vector<1x1x4x128xf32>
    %201 = vector.shape_cast %200 : vector<1x1x4x128xf32> to vector<4x128xf32>
    %202 = vector.shape_cast %195 : vector<4x128xf32> to vector<1x1x4x128xf32>
    tpu.vector_store %arg7[%c0_108, %c1_109, %c0_110, %c0_111], %202 {strides = array<i32>} : memref<1x2x4x128xf32, #tpu.memory_space<vmem>>, vector<1x1x4x128xf32>,
    %c0_112 = arith.constant 0 : index
    %c1_113 = arith.constant 1 : index
    %c0_114 = arith.constant 0 : index
    %c0_115 = arith.constant 0 : index
    %203 = vector.load %arg8[%c0_112, %c1_113, %c0_114, %c0_115] : memref<1x2x4x128xf32, #tpu.memory_space<vmem>>, vector<1x1x4x128xf32>
    %204 = vector.shape_cast %203 : vector<1x1x4x128xf32> to vector<4x128xf32>
    %205 = vector.shape_cast %199 : vector<4x128xf32> to vector<1x1x4x128xf32>
    tpu.vector_store %arg8[%c0_112, %c1_113, %c0_114, %c0_115], %205 {strides = array<i32>} : memref<1x2x4x128xf32, #tpu.memory_space<vmem>>, vector<1x1x4x128xf32>,
    return
  }
  func.func @transform_0(%arg0: i32, %arg1: i32, %arg2: i32) -> (i32, i32, i32, i32) {
    %c0_i32 = arith.constant 0 : i32
    %c0_i32_0 = arith.constant 0 : i32
    %c0_i32_1 = arith.constant 0 : i32
    return %arg0, %arg2, %c0_i32, %c0_i32_0 : i32, i32, i32, i32
  }
  func.func @transform_1(%arg0: i32, %arg1: i32, %arg2: i32) -> (i32, i32, i32, i32) {
    %c0_i32 = arith.constant 0 : i32
    %c0_i32_0 = arith.constant 0 : i32
    %c0_i32_1 = arith.constant 0 : i32
    return %arg0, %arg2, %c0_i32, %c0_i32_0 : i32, i32, i32, i32
  }
  func.func @transform_2(%arg0: i32, %arg1: i32, %arg2: i32) -> (i32, i32, i32, i32) {
    %c0_i32 = arith.constant 0 : i32
    %c0_i32_0 = arith.constant 0 : i32
    %c0_i32_1 = arith.constant 0 : i32
    return %arg0, %c0_i32, %arg1, %c0_i32_0 : i32, i32, i32, i32
  }
  func.func @transform_3(%arg0: i32, %arg1: i32, %arg2: i32) -> (i32, i32, i32, i32) {
    %c0_i32 = arith.constant 0 : i32
    %c0_i32_0 = arith.constant 0 : i32
    %c0_i32_1 = arith.constant 0 : i32
    return %arg0, %c0_i32, %arg1, %c0_i32_0 : i32, i32, i32, i32
  }
  func.func @transform_4(%arg0: i32, %arg1: i32, %arg2: i32) -> (i32, i32, i32, i32) {
    %c0_i32 = arith.constant 0 : i32
    %c0_i32_0 = arith.constant 0 : i32
    return %arg0, %arg2, %arg1, %c0_i32 : i32, i32, i32, i32
  }
  func.func @transform_5(%arg0: i32, %arg1: i32, %arg2: i32) -> (i32, i32, i32, i32) {
    %c0_i32 = arith.constant 0 : i32
    %c0_i32_0 = arith.constant 0 : i32
    return %arg0, %arg2, %arg1, %c0_i32 : i32, i32, i32, i32
  }
}

</mosaic_0001>

<bundles_post_ra>
// kernel: custom-call.1
= control target key start
LH: loop header
LB: loop body
LE: loop exit
PB: predicated region body
PF: predicated region fallthrough
CT: control target
= control target key end

     0   :  { %s56_s0 = inlined_call_operand.hbm [shape: c64[4,4,4,4], index: 0, kind: input, shape index: {}]   ;;  %s57_s1 = inlined_call_operand.vmem [shape: f32[4,4,4,4], index: 1, kind: output, shape index: {}]  }
   0x1   :  { %s2_s8 = scalar_lea.hbm %s56_s0, 64 }
   0x2   :  { %3 = vsyncpa [#allocation0], 0  ;;  %s5_s9 = sshll.u32 %s2_s8, 4  ;;  %s7_s12 = sshll.u32 %s57_s1, 4  ;;  %s6_s9 = int_to_ptr.hbm [resolvable:$true] %s5_s9  ;;  %s8_s12 = int_to_ptr.vmem [resolvable:$true] %s7_s12 }
   0x3   :  { %10 = dma.hbm_to_vmem [thread:$0]  %s6_s9, 1024, %s8_s12, [#allocation0] }
   0x4   :  { %38 = dma.done.wait [#allocation0], 1024  }
   0x5   :  { %39 = vsyncadd [#allocation0], 4294966272 }
   0x6   :  { %13 = vsyncpa [#allocation0], 1 }

// kernel: custom-call
= control target key start
LH: loop header
LB: loop body
LE: loop exit
PB: predicated region body
PF: predicated region fallthrough
CT: control target
= control target key end

     0   :  { %2 = vsyncpa [#allocation0], 0  ;;  %s55_s0 = inlined_call_operand.hbm [shape: c64[4,4,4,4], index: 0, kind: input, shape index: {}]   ;;  %s56_s1 = inlined_call_operand.vmem [shape: f32[4,4,4,4], index: 1, kind: output, shape index: {}]  }
   0x1   :  { %s4_s8 = sshll.u32 %s55_s0, 4  ;;  %s6_s11 = sshll.u32 %s56_s1, 4  ;;  %s5_s8 = int_to_ptr.hbm [resolvable:$true] %s4_s8  ;;  %s7_s11 = int_to_ptr.vmem [resolvable:$true] %s6_s11 }
   0x2   :  { %9 = dma.hbm_to_vmem [thread:$0]  %s5_s8, 1024, %s7_s11, [#allocation0] }
   0x3   :  { %37 = dma.done.wait [#allocation0], 1024  }
   0x4   :  { %38 = vsyncadd [#allocation0], 4294966272 }
   0x5   :  { %12 = vsyncpa [#allocation0], 1 }

// kernel: squeeze.2
= control target key start
LH: loop header
LB: loop body
LE: loop exit
PB: predicated region body
PF: predicated region fallthrough
CT: control target
= control target key end

     0   :  { %vm11_vm0 = vcmask 31744   ;;  %s102_s10 = smov 116   ;;  %s103_s11 = smov 120   ;;  %s152_s0 = inlined_call_operand.vmem [shape: f32[1,2,4,16], index: 0, kind: input, shape index: {}]   ;;  %s153_s1 = inlined_call_operand.vmem [shape: f32[2,4,4,4], index: 1, kind: output, shape index: {}]  }
   0x1   :  { %v90_v0 = vld [vmem:[%s152_s0 + $0x4] sm:$0xf]  ;;  %v8_v1 = vld [vmem:[%s152_s0] sm:$0xf]  ;;  %s101_s0 = smov 124  }
   0x2   :  { %7 = vst [vmem:[#allocation1 + $0x8] sm:$0xf] %v90_v0 }
   0x3   :  { %9 = vst [vmem:[#allocation1] sm:$0xf] %v8_v1 }
   0x9   :  { %v14_v2 = vld [vmem:[#allocation1 + $0x8] sm:$0xf]  }
   0xa   :  { %v10_v3 = vld [vmem:[#allocation1] sm:$0xf]   ;;  %17 = vst.msk [vmem:[#allocation0 + $0x20] ss:$8 sm:$0xf] %vm11_vm0, %v14_v2  }
   0xb   :  { %v18_v4 = vld.sshfl [vmem:[#allocation1] sm:$0xff pattern:$0xba983210]   ;;  %12 = vst.msk [vmem:[#allocation0] ss:$8 sm:$0xf] %vm11_vm0, %v10_v3  }
   0xc   :  { %19 = vrot.lane.b32.xlu0 %v18_v4, %s101_s0  ;;  %35 = vrot.lane.b32.xlu1 %v18_v4, %s102_s10 }
  0x14   :  { %27 = vrot.lane.b32.xlu0 %v18_v4, %s103_s11 }
  0x7e   :  { %v20_v5 = vpop.permute.xlu0 %19   ;;  %v36_v6 = vpop.permute.xlu1 %35  }
  0x7f   :  { %23 = vst.msk [vmem:[#allocation0 + $0x1] ss:$8 sm:$0xf] %vm11_vm0, %v20_v5  }
  0x80   :  { %25 = vst.msk [vmem:[#allocation0 + $0x1] ss:$8 sm:$0xf0] %vm11_vm0, %v20_v5  }
  0x81   :  { %39 = vst.msk [vmem:[#allocation0 + $0x3] ss:$8 sm:$0xf] %vm11_vm0, %v36_v6  }
  0x82   :  { %41 = vst.msk [vmem:[#allocation0 + $0x3] ss:$8 sm:$0xf0] %vm11_vm0, %v36_v6  }
  0x86   :  { %v28_v7 = vpop.permute.xlu0 %27  }
  0x87   :  { %31 = vst.msk [vmem:[#allocation0 + $0x2] ss:$8 sm:$0xf] %vm11_vm0, %v28_v7  }
  0x88   :  { %33 = vst.msk [vmem:[#allocation0 + $0x2] ss:$8 sm:$0xf0] %vm11_vm0, %v28_v7  }
  0x8e   :  { %v44_v8 = vld [vmem:[#allocation0] sm:$0xf]  ;;  %v49_v9 = vld [vmem:[#allocation0 + $0x8] sm:$0xf]  ;;  %v55_v10 = vld [vmem:[#allocation0 + $0x10] sm:$0xf] }
  0x8f   :  { %47 = vst [vmem:[%s153_s1] sm:$0xf] %v44_v8  ;;  %v61_v11 = vld [vmem:[#allocation0 + $0x18] sm:$0xf]  ;;  %v67_v12 = vld [vmem:[#allocation0 + $0x20] sm:$0xf] }
  0x90   :  { %91 = vst [vmem:[%s153_s1 + $0x4] sm:$0xf] %v49_v9  ;;  %v73_v13 = vld [vmem:[#allocation0 + $0x28] sm:$0xf]  ;;  %v79_v14 = vld [vmem:[#allocation0 + $0x30] sm:$0xf] }
  0x91   :  { %92 = vst [vmem:[%s153_s1 + $0x8] sm:$0xf] %v55_v10  ;;  %v85_v15 = vld [vmem:[#allocation0 + $0x38] sm:$0xf] }
  0x92   :  { %93 = vst [vmem:[%s153_s1 + $0xc] sm:$0xf] %v61_v11 }
  0x93   :  { %94 = vst [vmem:[%s153_s1 + $0x10] sm:$0xf] %v67_v12 }
  0x94   :  { %95 = vst [vmem:[%s153_s1 + $0x14] sm:$0xf] %v73_v13 }
  0x95   :  { %96 = vst [vmem:[%s153_s1 + $0x18] sm:$0xf] %v79_v14 }
  0x96   :  { %97 = vst [vmem:[%s153_s1 + $0x1c] sm:$0xf] %v85_v15 }

// kernel: reverse.0
= control target key start
LH: loop header
LB: loop body
LE: loop exit
PB: predicated region body
PF: predicated region fallthrough
CT: control target
= control target key end

     0   :  { %v72_v3 = vlaneseq  ;;  %v65_v6 = vld [vmem:[#allocation0 + $0x7] ss:$-1 sm:$0xff]  ;;  %v79_v8 = vld [vmem:[#allocation0 + $0x17] ss:$-1 sm:$0xff]  ;;  %s331_s0 = inlined_call_operand.vmem [shape: f32[2,4,16,7], index: 0, kind: input, shape index: {}]   ;;  %s332_s1 = inlined_call_operand.vmem [shape: f32[2,4,16,7], index: 1, kind: output, shape index: {}]  }
   0x1   :  { %v45_v0 = vld [vmem:[%s331_s0] sm:$0xff]  ;;  %v47_v1 = vld [vmem:[%s331_s0 + $0x8] sm:$0xff]  ;;  %v49_v2 = vld [vmem:[%s331_s0 + $0x10] sm:$0xff]  ;;  %v66_v12 = vrot.slane %v65_v6, 1  ;;  %v80_v13 = vrot.slane %v79_v8, 1 }
   0x2   :  { %46 = vst [vmem:[#allocation0 + $0x8] sm:$0xff] %v45_v0  ;;  %v51_v4 = vld [vmem:[%s331_s0 + $0x18] sm:$0xff]  ;;  %v53_v5 = vld [vmem:[%s331_s0 + $0x20] sm:$0xff]  ;;  %v55_v7 = vld [vmem:[%s331_s0 + $0x28] sm:$0xff]  ;;  %v73_v10 = vshrl.u32 %v72_v3, 7 }
   0x3   :  { %48 = vst [vmem:[#allocation0 + $0x18] sm:$0xff] %v47_v1  ;;  %v57_v9 = vld [vmem:[%s331_s0 + $0x30] sm:$0xff]  ;;  %v59_v11 = vld [vmem:[%s331_s0 + $0x38] sm:$0xff]  ;;  %v93_v14 = vld [vmem:[#allocation0 + $0x27] ss:$-1 sm:$0xff] }
   0x4   :  { %50 = vst [vmem:[#allocation0 + $0x28] sm:$0xff] %v49_v2  ;;  %vm74_vm0 = vcmp.lt.s32.totalorder %v73_v10, 7  ;;  %v107_v16 = vld [vmem:[#allocation0 + $0x37] ss:$-1 sm:$0xff]  ;;  %v94_v19 = vrot.slane %v93_v14, 1 }
   0x5   :  { %52 = vst [vmem:[#allocation0 + $0x38] sm:$0xff] %v51_v4  ;;  %v121_v22 = vld [vmem:[#allocation0 + $0x47] ss:$-1 sm:$0xff]  ;;  %v108_v24 = vrot.slane %v107_v16, 1  ;;  %v135_v28 = vld [vmem:[#allocation0 + $0x57] ss:$-1 sm:$0xff] }
   0x6   :  { %54 = vst [vmem:[#allocation0 + $0x48] sm:$0xff] %v53_v5  ;;  %v122_v29 = vrot.slane %v121_v22, 1  ;;  %v149_v32 = vld [vmem:[#allocation0 + $0x67] ss:$-1 sm:$0xff]  ;;  %v136_v33 = vrot.slane %v135_v28, 1 }
   0x7   :  { %56 = vst [vmem:[#allocation0 + $0x58] sm:$0xff] %v55_v7  ;;  %v163_v36 = vld [vmem:[#allocation0 + $0x77] ss:$-1 sm:$0xff]  ;;  %v150_v37 = vrot.slane %v149_v32, 1 }
   0x8   :  { %58 = vst [vmem:[#allocation0 + $0x68] sm:$0xff] %v57_v9  ;;  %v164_v40 = vrot.slane %v163_v36, 1 }
   0x9   :  { %60 = vst [vmem:[#allocation0 + $0x78] sm:$0xff] %v59_v11  ;;  %v70_v15 = vld [vmem:[#allocation0 + $0xf] ss:$-1 sm:$0xff] }
   0xa   :  { %67 = vst [vmem:[#allocation1] sm:$0xff] %v66_v12  ;;  %v71_v17 = vrot.slane %v70_v15, 1  ;;  %v84_v18 = vld [vmem:[#allocation0 + $0x1f] ss:$-1 sm:$0xff] }
   0xb   :  { %81 = vst [vmem:[#allocation1 + $0x8] sm:$0xff] %v80_v13  ;;  %v85_v20 = vrot.slane %v84_v18, 1  ;;  %v98_v21 = vld [vmem:[#allocation0 + $0x2f] ss:$-1 sm:$0xff] }
   0xc   :  { %75 = vst.msk [vmem:[#allocation1] sm:$0xff] %vm74_vm0, %v71_v17  ;;  %v99_v23 = vrot.slane %v98_v21, 1  ;;  %v112_v25 = vld [vmem:[#allocation0 + $0x3f] ss:$-1 sm:$0xff] }
   0xd   :  { %89 = vst.msk [vmem:[#allocation1 + $0x8] sm:$0xff] %vm74_vm0, %v85_v20  ;;  %v113_v26 = vrot.slane %v112_v25, 1  ;;  %v126_v27 = vld [vmem:[#allocation0 + $0x4f] ss:$-1 sm:$0xff] }
   0xe   :  { %95 = vst [vmem:[#allocation1 + $0x10] sm:$0xff] %v94_v19  ;;  %v140_v30 = vld [vmem:[#allocation0 + $0x5f] ss:$-1 sm:$0xff]  ;;  %v127_v31 = vrot.slane %v126_v27, 1 }
   0xf   :  { %103 = vst.msk [vmem:[#allocation1 + $0x10] sm:$0xff] %vm74_vm0, %v99_v23  ;;  %v154_v34 = vld [vmem:[#allocation0 + $0x6f] ss:$-1 sm:$0xff]  ;;  %v141_v35 = vrot.slane %v140_v30, 1 }
  0x10   :  { %109 = vst [vmem:[#allocation1 + $0x18] sm:$0xff] %v108_v24  ;;  %v168_v38 = vld [vmem:[#allocation0 + $0x7f] ss:$-1 sm:$0xff]  ;;  %v155_v39 = vrot.slane %v154_v34, 1 }
  0x11   :  { %117 = vst.msk [vmem:[#allocation1 + $0x18] sm:$0xff] %vm74_vm0, %v113_v26  ;;  %v169_v41 = vrot.slane %v168_v38, 1 }
  0x12   :  { %123 = vst [vmem:[#allocation1 + $0x20] sm:$0xff] %v122_v29 }
  0x13   :  { %131 = vst.msk [vmem:[#allocation1 + $0x20] sm:$0xff] %vm74_vm0, %v127_v31  ;;  %v216_v42 = vld [vmem:[#allocation1] sm:$0xff] }
  0x14   :  { %137 = vst [vmem:[#allocation1 + $0x28] sm:$0xff] %v136_v33  ;;  %v218_v43 = vld [vmem:[#allocation1 + $0x8] sm:$0xff] }
  0x15   :  { %145 = vst.msk [vmem:[#allocation1 + $0x28] sm:$0xff] %vm74_vm0, %v141_v35 }
  0x16   :  { %151 = vst [vmem:[#allocation1 + $0x30] sm:$0xff] %v150_v37  ;;  %v220_v44 = vld [vmem:[#allocation1 + $0x10] sm:$0xff] }
  0x17   :  { %159 = vst.msk [vmem:[#allocation1 + $0x30] sm:$0xff] %vm74_vm0, %v155_v39 }
  0x18   :  { %165 = vst [vmem:[#allocation1 + $0x38] sm:$0xff] %v164_v40  ;;  %v222_v45 = vld [vmem:[#allocation1 + $0x18] sm:$0xff] }
  0x19   :  { %173 = vst.msk [vmem:[#allocation1 + $0x38] sm:$0xff] %vm74_vm0, %v169_v41 }
  0x1a   :  { %217 = vst [vmem:[%s332_s1] sm:$0xff] %v216_v42  ;;  %v224_v46 = vld [vmem:[#allocation1 + $0x20] sm:$0xff] }
  0x1b   :  { %219 = vst [vmem:[%s332_s1 + $0x8] sm:$0xff] %v218_v43 }
  0x1c   :  { %221 = vst [vmem:[%s332_s1 + $0x10] sm:$0xff] %v220_v44  ;;  %v226_v47 = vld [vmem:[#allocation1 + $0x28] sm:$0xff] }
  0x1d   :  { %223 = vst [vmem:[%s332_s1 + $0x18] sm:$0xff] %v222_v45 }
  0x1e   :  { %225 = vst [vmem:[%s332_s1 + $0x20] sm:$0xff] %v224_v46  ;;  %v228_v48 = vld [vmem:[#allocation1 + $0x30] sm:$0xff] }
  0x1f   :  { %227 = vst [vmem:[%s332_s1 + $0x28] sm:$0xff] %v226_v47 }
  0x20   :  { %229 = vst [vmem:[%s332_s1 + $0x30] sm:$0xff] %v228_v48  ;;  %v230_v49 = vld [vmem:[#allocation1 + $0x38] sm:$0xff] }
  0x21   :  { %231 = vst [vmem:[%s332_s1 + $0x38] sm:$0xff] %v230_v49 }

// kernel: fourier_spectral_conv2d.1
= control target key start
LH: loop header
LB: loop body
LE: loop exit
PB: predicated region body
PF: predicated region fallthrough
CT: control target
= control target key end

     0   :  { %s890_s18 = smov 0   ;;  %s892_s19 = smov 0   ;;  %s989_s0 = inlined_call_operand.vmem [shape: f32[2,2,4,128], index: 0, kind: input, shape index: {}]   ;;  %s990_s1 = inlined_call_operand.vmem [shape: f32[2,2,4,128], index: 1, kind: input, shape index: {}]   ;;  %s991_s2 = inlined_call_operand.vmem [shape: f32[2,4,4,128], index: 2, kind: input, shape index: {}]   ;;  %s992_s3 = inlined_call_operand.vmem [shape: f32[2,4,4,128], index: 3, kind: input, shape index: {}]   ;;  %s993_s4 = inlined_call_operand.vmem [shape: f32[2,2,4,128], index: 4, kind: output, shape index: {0}]   ;;  %s994_s5 = inlined_call_operand.vmem [shape: f32[2,2,4,128], index: 5, kind: output, shape index: {1}]  }
   0x1   :  { %s894_s20 = smov 0  }
   0x2 LB: > { %s35_s21 = sadd.s32 1, %s854_s19  ;;  %p753_p0 = scmp.ge.s32.totalorder %s858_s20, 1  ;;  %s858_s20 = sphi %s894_s20, %s16_s20   ;;  %s854_s19 = sphi %s892_s19, %s996_s19   ;;  %s850_s18 = sphi %s890_s18, %s995_s18  }
   0x3   : > { %p37_p1 = scmp.ge.s32.totalorder %s35_s21, 2  ;;  %p271_p2 = scmp.lt.s32.totalorder %s858_s20, 3 }
   0x5   : > { %s998_s21 = smov (%p37_p1, %s35_s21), 0  ;;  %p272_p3 = pnand %p753_p0, %p271_p2 }
   0x6   : > { %p348_p4 = scmp.lt.s32.totalorder (!%p272_p3), %s850_s18, 1 }
   0x7   : > { %275 = sbr.rel (%p272_p3) target bundleno = 38 (0x26), region = 36 }
   0xc   : > { %s1000_s18 = smov (!%p348_p4, %s850_s18), 1 }
   0xd   : > { %s908_s22 = sshll.u32 %s1000_s18, 3  ;;  %s792_s23 = sshll.u32 %s1000_s18, 4 }
   0xe   : > { %s914_s26 = scalar_lea.vmem %s989_s0, %s908_s22  ;;  %s920_s29 = scalar_lea.vmem %s990_s1, %s908_s22 }
   0xf   : > { %s925_s7 = scalar_lea.vmem %s991_s2, %s792_s23  ;;  %s930_s10 = scalar_lea.vmem %s992_s3, %s792_s23  ;;  %v820_v0 = vld [vmem:[%s914_s26] ss:$0 sm:$0xff]  ;;  %v822_v5 = vld [vmem:[%s914_s26 + $0x1] ss:$0 sm:$0xff]  ;;  %v824_v13 = vld [vmem:[%s914_s26 + $0x2] ss:$0 sm:$0xff] }
  0x10   : > { %v821_v1 = vld [vmem:[%s920_s29] ss:$0 sm:$0xff]  ;;  %v823_v8 = vld [vmem:[%s920_s29 + $0x1] ss:$0 sm:$0xff]  ;;  %v766_v9 = vld [vmem:[%s925_s7 + $0x4] sm:$0xf]  ;;  %s960_s13 = scalar_lea.vmem %s993_s4, %s908_s22  ;;  %s967_s16 = scalar_lea.vmem %s994_s5, %s908_s22 }
  0x11   : > { %v413_v2 = vld [vmem:[%s925_s7] sm:$0xf]  ;;  %v767_v10 = vld [vmem:[%s930_s10 + $0x4] sm:$0xf]  ;;  %v431_v12 = vmul.f32 %v822_v5, %v766_v9  ;;  %v768_v18 = vld [vmem:[%s925_s7 + $0x8] sm:$0xf]  ;;  %v436_v21 = vmul.f32 %v823_v8, %v766_v9 }
  0x12   : > { %v414_v3 = vld [vmem:[%s930_s10] sm:$0xf]  ;;  %v415_v4 = vmul.f32 %v820_v0, %v413_v2  ;;  %v420_v11 = vmul.f32 %v821_v1, %v413_v2  ;;  %v435_v14 = vmul.f32 %v822_v5, %v767_v10  ;;  %v432_v16 = vmul.f32 %v823_v8, %v767_v10  ;;  %v769_v19 = vld [vmem:[%s930_s10 + $0x8] sm:$0xf]  ;;  %v770_v28 = vld [vmem:[%s925_s7 + $0xc] sm:$0xf] }
  0x13   : > { %v419_v6 = vmul.f32 %v820_v0, %v414_v3  ;;  %v416_v7 = vmul.f32 %v821_v1, %v414_v3  ;;  %v825_v17 = vld [vmem:[%s920_s29 + $0x2] ss:$0 sm:$0xff]  ;;  %v447_v22 = vmul.f32 %v824_v13, %v768_v18  ;;  %v826_v23 = vld [vmem:[%s914_s26 + $0x3] ss:$0 sm:$0xff]  ;;  %v451_v24 = vmul.f32 %v824_v13, %v769_v19  ;;  %v771_v29 = vld [vmem:[%s930_s10 + $0xc] sm:$0xf] }
  0x14   : > { %v433_v25 = vsub.f32 %v431_v12, %v432_v16  ;;  %v448_v26 = vmul.f32 %v825_v17, %v769_v19  ;;  %v827_v27 = vld [vmem:[%s920_s29 + $0x3] ss:$0 sm:$0xff]  ;;  %v437_v30 = vadd.f32 %v436_v21, %v435_v14  ;;  %v452_v31 = vmul.f32 %v825_v17, %v768_v18  ;;  %v828_v34 = vld [vmem:[%s914_s26 + $0x4] ss:$0 sm:$0xff]  ;;  %v830_v45 = vld [vmem:[%s914_s26 + $0x5] ss:$0 sm:$0xff] }
  0x15   : > { %v417_v15 = vsub.f32 %v415_v4, %v416_v7  ;;  %v421_v20 = vadd.f32 %v420_v11, %v419_v6  ;;  %v463_v32 = vmul.f32 %v826_v23, %v770_v28  ;;  %v467_v33 = vmul.f32 %v826_v23, %v771_v29  ;;  %v829_v39 = vld [vmem:[%s920_s29 + $0x4] ss:$0 sm:$0xff]  ;;  %v479_v40 = vld [vmem:[%s925_s7] sm:$0xf]  ;;  %v831_v50 = vld [vmem:[%s920_s29 + $0x5] ss:$0 sm:$0xff] }
  0x16   : > { %v449_v36 = vsub.f32 %v447_v22, %v448_v26  ;;  %v464_v37 = vmul.f32 %v827_v27, %v771_v29  ;;  %v480_v41 = vld [vmem:[%s930_s10] sm:$0xf]  ;;  %v453_v42 = vadd.f32 %v452_v31, %v451_v24  ;;  %v468_v43 = vmul.f32 %v827_v27, %v770_v28  ;;  %v776_v51 = vld [vmem:[%s925_s7 + $0x4] sm:$0xf]  ;;  %v780_v63 = vld [vmem:[%s925_s7 + $0x8] sm:$0xf] }
  0x17   : > { %v434_v35 = vadd.f32 %v433_v25, %v417_v15  ;;  %v438_v38 = vadd.f32 %v437_v30, %v421_v20  ;;  %v481_v44 = vmul.f32 %v828_v34, %v479_v40  ;;  %v485_v46 = vmul.f32 %v828_v34, %v480_v41  ;;  %v777_v52 = vld [vmem:[%s930_s10 + $0x4] sm:$0xf]  ;;  %v781_v0 = vld [vmem:[%s930_s10 + $0x8] sm:$0xf]  ;;  %v784_v10 = vld [vmem:[%s925_s7 + $0xc] sm:$0xf] }
  0x18   : > { %v465_v48 = vsub.f32 %v463_v32, %v464_v37  ;;  %v482_v49 = vmul.f32 %v829_v39, %v480_v41  ;;  %v486_v53 = vmul.f32 %v829_v39, %v479_v40  ;;  %v469_v55 = vadd.f32 %v468_v43, %v467_v33  ;;  %v832_v57 = vld [vmem:[%s914_s26 + $0x6] ss:$0 sm:$0xff]  ;;  %v834_v4 = vld [vmem:[%s914_s26 + $0x7] ss:$0 sm:$0xff]  ;;  %v785_v12 = vld [vmem:[%s930_s10 + $0xc] sm:$0xf] }
  0x19   : > { %v450_v47 = vadd.f32 %v449_v36, %v434_v35  ;;  %v454_v54 = vadd.f32 %v453_v42, %v438_v38  ;;  %v495_v56 = vmul.f32 %v830_v45, %v776_v51  ;;  %v499_v58 = vmul.f32 %v830_v45, %v777_v52  ;;  %v833_v62 = vld [vmem:[%s920_s29 + $0x6] ss:$0 sm:$0xff]  ;;  %v835_v9 = vld [vmem:[%s920_s29 + $0x7] ss:$0 sm:$0xff] }
  0x1a   : > { %v483_v60 = vsub.f32 %v481_v44, %v482_v49  ;;  %v496_v61 = vmul.f32 %v831_v50, %v777_v52  ;;  %v487_v1 = vadd.f32 %v486_v53, %v485_v46  ;;  %v509_v3 = vmul.f32 %v832_v57, %v780_v63 }
  0x1b   : > { %v466_v59 = vadd.f32 %v465_v48, %v450_v47  ;;  %v470_v2 = vadd.f32 %v469_v55, %v454_v54  ;;  %v500_v5 = vmul.f32 %v831_v50, %v776_v51  ;;  %v513_v6 = vmul.f32 %v832_v57, %v781_v0 }
  0x1c   : > { %v497_v7 = vsub.f32 %v495_v56, %v496_v61  ;;  %v510_v8 = vmul.f32 %v833_v62, %v781_v0  ;;  %v514_v11 = vmul.f32 %v833_v62, %v780_v63  ;;  %v523_v13 = vmul.f32 %v834_v4, %v784_v10 }
  0x1d   : > { %471 = vst [vmem:[%s960_s13] sm:$0xf] %v466_v59  ;;  %v501_v14 = vadd.f32 %v500_v5, %v499_v58  ;;  %v524_v17 = vmul.f32 %v835_v9, %v785_v12  ;;  %v527_v20 = vmul.f32 %v834_v4, %v785_v12  ;;  %v528_v21 = vmul.f32 %v835_v9, %v784_v10 }
  0x1e   : > { %472 = vst [vmem:[%s967_s16] sm:$0xf] %v470_v2  ;;  %v498_v15 = vadd.f32 %v497_v7, %v483_v60  ;;  %v511_v16 = vsub.f32 %v509_v3, %v510_v8  ;;  %v515_v18 = vadd.f32 %v514_v11, %v513_v6 }
  0x1f   : > { %v502_v19 = vadd.f32 %v501_v14, %v487_v1  ;;  %v525_v23 = vsub.f32 %v523_v13, %v524_v17  ;;  %v529_v25 = vadd.f32 %v528_v21, %v527_v20 }
  0x20   : > { %v512_v22 = vadd.f32 %v511_v16, %v498_v15 }
  0x21   : > { %v516_v24 = vadd.f32 %v515_v18, %v502_v19 }
  0x22   : > { %v526_v26 = vadd.f32 %v525_v23, %v512_v22 }
  0x23   : > { %v530_v27 = vadd.f32 %v529_v25, %v516_v24 }
  0x24   : > { %786 = vst [vmem:[%s960_s13 + $0x4] sm:$0xf] %v526_v26 }
  0x25   : > { %787 = vst [vmem:[%s967_s16 + $0x4] sm:$0xf] %v530_v27 }
  0x26 PF: > { %s16_s20 = sadd.s32 1, %s858_s20   ;;  %s995_s18 = smov %s854_s19 }
  0x27   : > { %p13_p5 = scmp.ge.s32.totalorder %s16_s20, 4   ;;  %s996_s19 = smov %s998_s21 }
  0x29   :  { %15 = sbr.rel (!%p13_p5) target bundleno = 2 (0x2), region = 97 }

</bundles_post_ra>
